<compile_context>
chip_gen: v6e
topology: v6e:2x2x1
jax: 0.10.0
libtpu: 0.0.40
codegen_flags: <defaults>
</compile_context>

<pallas_src>
import functools
import math

import jax
import jax.numpy as jnp
from jax.experimental import pallas as pl
from jax.experimental.pallas import tpu as pltpu


# ---------------------------------------------------------------------------
# Fused conv(GEMM) + bias + InstanceNorm + (ReLU | residual) Pallas kernel.
# ---------------------------------------------------------------------------
def _fused_conv_kernel(p_ref, w_ref, b_ref, *rest, do_norm, do_relu, has_res, eps):
    if has_res:
        res_ref, o_ref = rest
    else:
        (o_ref,) = rest

    patches = p_ref[0]                 # (K*K*C_in, HW), lane axis = HW (lane-dense)
    w2d = w_ref[...]                   # (C_out, K*K*C_in), resident in VMEM
    acc = jnp.dot(w2d, patches, preferred_element_type=jnp.float32)  # (C_out, HW)
    acc = acc + b_ref[...]             # bias (C_out, 1) broadcast over lanes

    if do_norm:
        # InstanceNorm2d defaults: affine=False, biased variance, eps=1e-5.
        mean = jnp.mean(acc, axis=1, keepdims=True)
        cen = acc - mean
        var = jnp.mean(cen * cen, axis=1, keepdims=True)
        acc = cen * jax.lax.rsqrt(var + eps)
    if do_relu:
        acc = jnp.maximum(acc, 0.0)
    if has_res:
        acc = acc + res_ref[0].astype(jnp.float32)

    o_ref[0] = acc.astype(o_ref.dtype)


def _fused_conv(patches, w2d, bias, *, do_norm, do_relu, residual=None):
    """patches: (N, K*K*C_in, HW); w2d: (C_out, K*K*C_in); bias: (C_out,);
    residual: optional (N, C_out, HW). Returns (N, C_out, HW)."""
    N, KKC, HW = patches.shape
    C_out = w2d.shape[0]
    b2 = bias.reshape(C_out, 1).astype(jnp.float32)

    kernel = functools.partial(
        _fused_conv_kernel, do_norm=do_norm, do_relu=do_relu,
        has_res=residual is not None, eps=1e-5)

    in_specs = [
        pl.BlockSpec((1, KKC, HW), lambda n: (n, 0, 0)),
        pl.BlockSpec((C_out, KKC), lambda n: (0, 0)),
        pl.BlockSpec((C_out, 1), lambda n: (0, 0)),
    ]
    args = [patches, w2d, b2]
    if residual is not None:
        in_specs.append(pl.BlockSpec((1, C_out, HW), lambda n: (n, 0, 0)))
        args.append(residual)

    return pl.pallas_call(
        kernel,
        out_shape=jax.ShapeDtypeStruct((N, C_out, HW), jnp.float32),
        grid=(N,),
        in_specs=in_specs,
        out_specs=pl.BlockSpec((1, C_out, HW), lambda n: (n, 0, 0)),
        compiler_params=pltpu.CompilerParams(
            dimension_semantics=("parallel",)),
    )(*args)


# ---------------------------------------------------------------------------
# Wrapper-side layout prep (im2col patches + GEMM-shaped weights).
# ---------------------------------------------------------------------------
def _extract_patches(xp, K, stride, H_out, W_out):
    """xp: (N, C, Hp, Wp) already spatially padded.
    Returns (N, K*K*C, H_out*W_out), channel order = tap-major ((ky*K+kx)*C + c)."""
    N, C, _, _ = xp.shape
    slabs = []
    for ky in range(K):
        for kx in range(K):
            s = xp[:, :,
                   ky:ky + (H_out - 1) * stride + 1:stride,
                   kx:kx + (W_out - 1) * stride + 1:stride]   # (N, C, H_out, W_out)
            slabs.append(s.reshape(N, C, H_out * W_out))
    return jnp.concatenate(slabs, axis=1)


def _weight_as_gemm(w):
    """(C_out, C_in, K, K) -> (C_out, K*K*C_in) matching _extract_patches order."""
    C_out, C_in, K, _ = w.shape
    return jnp.transpose(w, (0, 2, 3, 1)).reshape(C_out, K * K * C_in)


def conv_in_relu(x, w, b, *, pad, pad_mode, stride, do_relu=True, do_norm=True,
                 residual=None):
    """Fused Conv2d + InstanceNorm + (ReLU | residual add). x: (N, C_in, H, W)."""
    N, C_in, H, W = x.shape
    C_out, _, K, _ = w.shape
    xp = x if pad == 0 else jnp.pad(
        x, ((0, 0), (0, 0), (pad, pad), (pad, pad)), mode=pad_mode)
    H_out = (H + 2 * pad - K) // stride + 1
    W_out = (W + 2 * pad - K) // stride + 1
    patches = _extract_patches(xp, K, stride, H_out, W_out)
    res_flat = None
    if residual is not None:
        res_flat = residual.reshape(N, C_out, H_out * W_out)
    y = _fused_conv(patches, _weight_as_gemm(w), b,
                    do_norm=do_norm, do_relu=do_relu, residual=res_flat)
    return y.reshape(N, C_out, H_out, W_out)


# ---------------------------------------------------------------------------
# ContentEncoder forward (NCHW in / NCHW out, like the PyTorch module).
# ---------------------------------------------------------------------------
def content_encoder(x, params):
    w, b = params["stem"]
    y = conv_in_relu(x, w, b, pad=3, pad_mode="reflect", stride=1)        # 7x7
    for (w, b) in params["down"]:
        y = conv_in_relu(y, w, b, pad=1, pad_mode="constant", stride=2)   # 4x4 s2
    for (w1, b1), (w2, b2) in params["res"]:
        h = conv_in_relu(y, w1, b1, pad=1, pad_mode="reflect", stride=1)  # 3x3
        y = conv_in_relu(h, w2, b2, pad=1, pad_mode="reflect", stride=1,
                         do_relu=False, residual=y)                       # 3x3 + x
    return y


# ---------------------------------------------------------------------------
# Parameters (PyTorch-style uniform init).
# ---------------------------------------------------------------------------
def _conv_init(key, c_out, c_in, k):
    kw, kb = jax.random.split(key)
    bound = 1.0 / math.sqrt(c_in * k * k)
    w = jax.random.uniform(kw, (c_out, c_in, k, k), jnp.float32, -bound, bound)
    b = jax.random.uniform(kb, (c_out,), jnp.float32, -bound, bound)
    return w, b


def init_params(key, in_channels=3, dim=16, n_downsample=2, n_residual=3):
    key, ks = jax.random.split(key)
    params = {"stem": _conv_init(ks, dim, in_channels, 7), "down": [], "res": []}
    d = dim
    for _ in range(n_downsample):
        key, kd = jax.random.split(key)
        params["down"].append(_conv_init(kd, 2 * d, d, 4))
        d *= 2
    for _ in range(n_residual):
        key, k1, k2 = jax.random.split(key, 3)
        params["res"].append((_conv_init(k1, d, d, 3), _conv_init(k2, d, d, 3)))
    return params


# ---------------------------------------------------------------------------
# Pure-JAX reference (lax conv) for correctness checking.
# ---------------------------------------------------------------------------
def _inorm_ref(x, eps=1e-5):
    mean = jnp.mean(x, axis=(2, 3), keepdims=True)
    var = jnp.mean((x - mean) ** 2, axis=(2, 3), keepdims=True)
    return (x - mean) * jax.lax.rsqrt(var + eps)


def _conv_ref(x, w, b, stride=1, padding="VALID"):
    y = jax.lax.conv_general_dilated(
        x, w, (stride, stride), padding,
        dimension_numbers=("NCHW", "OIHW", "NCHW"))
    return y + b[None, :, None, None]


def _reference(x, params):
    w, b = params["stem"]
    xp = jnp.pad(x, ((0, 0), (0, 0), (3, 3), (3, 3)), mode="reflect")
    y = jax.nn.relu(_inorm_ref(_conv_ref(xp, w, b)))
    for (w, b) in params["down"]:
        y = jax.nn.relu(_inorm_ref(_conv_ref(y, w, b, stride=2,
                                             padding=[(1, 1), (1, 1)])))
    for (w1, b1), (w2, b2) in params["res"]:
        hp = jnp.pad(y, ((0, 0), (0, 0), (1, 1), (1, 1)), mode="reflect")
        h = jax.nn.relu(_inorm_ref(_conv_ref(hp, w1, b1)))
        hp2 = jnp.pad(h, ((0, 0), (0, 0), (1, 1), (1, 1)), mode="reflect")
        y = y + _inorm_ref(_conv_ref(hp2, w2, b2))
    return y


if __name__ == "__main__":
    key = jax.random.PRNGKey(0)
    N, C_in, H, W = 2, 3, 16, 16           # small NCHW input, like the torch module
    dim, n_down, n_res = 16, 2, 3          # scaled-down ContentEncoder config

    key, kx, kp = jax.random.split(key, 3)
    x = jax.random.normal(kx, (N, C_in, H, W), jnp.float32)
    params = init_params(kp, C_in, dim, n_down, n_res)

    out = jax.block_until_ready(content_encoder(x, params))
    ref = jax.block_until_ready(_reference(x, params))

    assert out.shape == (N, dim * 2 ** n_down, H // 2 ** n_down, W // 2 ** n_down)
    assert jnp.allclose(out, ref, atol=1e-3, rtol=1e-3), "mismatch vs reference"
    print("KERNEL_OK")
</pallas_src>

<mosaic_0001>
module attributes {stable_mosaic.version = 11 : i64} {
  func.func @_fused_conv_kernel(%arg0: i32, %arg1: memref<1x147x256xf32, #tpu.memory_space<vmem>>, %arg2: memref<16x147xf32, #tpu.memory_space<vmem>>, %arg3: memref<16x1xf32, #tpu.memory_space<vmem>>, %arg4: memref<1x16x256xf32, #tpu.memory_space<vmem>>) attributes {dimension_semantics = [#tpu.dimension_semantics<parallel>], iteration_bounds = array<i64: 2>, scalar_prefetch = 0 : i64, scratch_operands = 0 : i64, tpu.core_type = #tpu.core_type<tc>, window_params = [{transform_indices = @transform_0, window_bounds = array<i64: 1, 147, 256>}, {pipeline_mode = #tpu.pipeline_mode<synchronous>, transform_indices = @transform_1, window_bounds = array<i64: 16, 147>}, {pipeline_mode = #tpu.pipeline_mode<synchronous>, transform_indices = @transform_2, window_bounds = array<i64: 16, 1>}, {transform_indices = @transform_3, window_bounds = array<i64: 1, 16, 256>}]} {
    %c0 = arith.constant 0 : index
    %c0_0 = arith.constant 0 : index
    %c0_1 = arith.constant 0 : index
    %0 = vector.load %arg1[%c0, %c0_0, %c0_1] : memref<1x147x256xf32, #tpu.memory_space<vmem>>, vector<1x147x256xf32>
    %1 = vector.shape_cast %0 : vector<1x147x256xf32> to vector<147x256xf32>
    %c0_2 = arith.constant 0 : index
    %c0_3 = arith.constant 0 : index
    %2 = vector.load %arg2[%c0_2, %c0_3] : memref<16x147xf32, #tpu.memory_space<vmem>>, vector<16x147xf32>
    %cst = arith.constant dense<0.000000e+00> : vector<16x256xf32>
    %3 = tpu.matmul %2, %1, %cst {dimension_numbers = #tpu.dot_dimension_numbers<[1], [0], [0], [1], [0, 0, 1, 1], [], []>} : vector<16x147xf32>, vector<147x256xf32>, vector<16x256xf32> -> vector<16x256xf32>
    %c0_4 = arith.constant 0 : index
    %c0_5 = arith.constant 0 : index
    %4 = vector.load %arg3[%c0_4, %c0_5] : memref<16x1xf32, #tpu.memory_space<vmem>>, vector<16x1xf32>
    %5 = vector.broadcast %4 : vector<16x1xf32> to vector<16x256xf32>
    %6 = arith.addf %3, %5 : vector<16x256xf32>
    %cst_6 = arith.constant dense<0.000000e+00> : vector<16xf32>
    %7 = vector.multi_reduction <add>, %6, %cst_6 [1] : vector<16x256xf32> to vector<16xf32>
    %8 = vector.shape_cast %7 : vector<16xf32> to vector<16x1xf32>
    %cst_7 = arith.constant 2.560000e+02 : f32
    %9 = vector.broadcast %cst_7 : f32 to vector<16x1xf32>
    %10 = arith.divf %8, %9 : vector<16x1xf32>
    %11 = vector.broadcast %10 : vector<16x1xf32> to vector<16x256xf32>
    %12 = arith.subf %6, %11 : vector<16x256xf32>
    %13 = arith.mulf %12, %12 : vector<16x256xf32>
    %cst_8 = arith.constant dense<0.000000e+00> : vector<16xf32>
    %14 = vector.multi_reduction <add>, %13, %cst_8 [1] : vector<16x256xf32> to vector<16xf32>
    %15 = vector.shape_cast %14 : vector<16xf32> to vector<16x1xf32>
    %cst_9 = arith.constant 2.560000e+02 : f32
    %16 = vector.broadcast %cst_9 : f32 to vector<16x1xf32>
    %17 = arith.divf %15, %16 : vector<16x1xf32>
    %cst_10 = arith.constant 9.99999974E-6 : f32
    %18 = vector.broadcast %cst_10 : f32 to vector<16x1xf32>
    %19 = arith.addf %17, %18 : vector<16x1xf32>
    %20 = math.rsqrt %19 : vector<16x1xf32>
    %21 = vector.broadcast %20 : vector<16x1xf32> to vector<16x256xf32>
    %22 = arith.mulf %12, %21 : vector<16x256xf32>
    %cst_11 = arith.constant 0.000000e+00 : f32
    %23 = vector.broadcast %cst_11 : f32 to vector<16x256xf32>
    %24 = arith.maximumf %22, %23 : vector<16x256xf32>
    %c0_12 = arith.constant 0 : index
    %c0_13 = arith.constant 0 : index
    %c0_14 = arith.constant 0 : index
    %25 = vector.load %arg4[%c0_12, %c0_13, %c0_14] : memref<1x16x256xf32, #tpu.memory_space<vmem>>, vector<1x16x256xf32>
    %26 = vector.shape_cast %25 : vector<1x16x256xf32> to vector<16x256xf32>
    %27 = vector.shape_cast %24 : vector<16x256xf32> to vector<1x16x256xf32>
    tpu.vector_store %arg4[%c0_12, %c0_13, %c0_14], %27 {strides = array<i32>} : memref<1x16x256xf32, #tpu.memory_space<vmem>>, vector<1x16x256xf32>,
    return
  }
  func.func @transform_0(%arg0: i32) -> (i32, i32, i32) {
    %c0_i32 = arith.constant 0 : i32
    %c0_i32_0 = arith.constant 0 : i32
    %c0_i32_1 = arith.constant 0 : i32
    return %arg0, %c0_i32, %c0_i32_0 : i32, i32, i32
  }
  func.func @transform_1(%arg0: i32) -> (i32, i32) {
    %c0_i32 = arith.constant 0 : i32
    %c0_i32_0 = arith.constant 0 : i32
    %c0_i32_1 = arith.constant 0 : i32
    return %c0_i32, %c0_i32_0 : i32, i32
  }
  func.func @transform_2(%arg0: i32) -> (i32, i32) {
    %c0_i32 = arith.constant 0 : i32
    %c0_i32_0 = arith.constant 0 : i32
    %c0_i32_1 = arith.constant 0 : i32
    return %c0_i32, %c0_i32_0 : i32, i32
  }
  func.func @transform_3(%arg0: i32) -> (i32, i32, i32) {
    %c0_i32 = arith.constant 0 : i32
    %c0_i32_0 = arith.constant 0 : i32
    %c0_i32_1 = arith.constant 0 : i32
    return %arg0, %c0_i32, %c0_i32_0 : i32, i32, i32
  }
}

</mosaic_0001>

<bundles_post_ra>
// kernel: tpu_custom_call.1
= control target key start
LH: loop header
LB: loop body
LE: loop exit
PB: predicated region body
PF: predicated region fallthrough
CT: control target
= control target key end

     0   :  { %8 = vsyncpa [#allocation3], 0  ;;  %s779_s0 = inlined_call_operand.vmem [shape: f32[2,147,256], index: 0, kind: input, shape index: {}]   ;;  %s780_s1 = inlined_call_operand.vmem [shape: f32[16,147], index: 1, kind: input, shape index: {}]   ;;  %s781_s2 = inlined_call_operand.vmem [shape: f32[16,1], index: 2, kind: input, shape index: {}]   ;;  %s782_s3 = inlined_call_operand.hbm [shape: f32[2,16,256], index: 3, kind: output, shape index: {}]  }
   0x1   :  { %10 = vsyncpa [#allocation3 + $0x1], 0  ;;  %s619_s12 = smov 0   ;;  %s621_s13 = smov 0  }
   0x2   :  { %s623_s14 = smov 0   ;;  %s625_s15 = smov 0  }
   0x3 LB: > { %s640_s16 = sadd.s32 4294967295, %s593_s15   ;;  %s431_s17 = sadd.s32 4294967294, %s593_s15   ;;  %s593_s15 = sphi %s625_s15, %s788_s15   ;;  %s589_s14 = sphi %s623_s14, %s787_s14   ;;  %s585_s13 = sphi %s621_s13, %s786_s13   ;;  %s581_s12 = sphi %s619_s12, %s785_s12  }
   0x4   : > { %s644_s18 = sadd.s32 1, %s593_s15   ;;  %s91_s19 = sadd.s32 1, %s589_s14 }
   0x5   : > { %s88_s20 = ssub.s32 %s593_s15, %s644_s18  ;;  %p101_p0 = scmp.ne.s32.totalorder %s589_s14, %s585_s13 }
   0x6   : > { %p89_p1 = scmp.eq.s32.totalorder %s88_s20, 0  ;;  %p102_p2 = scmp.eq.s32.totalorder %s640_s16, 1 }
   0x7   : > { %p107_p3 = scmp.ne.s32.totalorder %s585_s13, %s581_s12  ;;  %p108_p4 = scmp.eq.s32.totalorder %s431_s17, 1 }
   0x8   : > { %s655_s21 = scalar_select %p89_p1, %s589_s14, %s91_s19  }
   0x9   : > { %p657_p5 = por %p102_p2, %p101_p0  ;;  %p661_p6 = por %p108_p4, %p107_p3 }
   0xa   : > { %p434_p7 = scmp.ge.s32.totalorder %s593_s15, 1  ;;  %p140_p8 = scmp.lt.s32.totalorder %s593_s15, 3 }
   0xc   : > { %p141_p9 = pnand %p434_p7, %p140_p8 }
   0xd   : > { %p164_p10 = scmp.lt.s32.totalorder (!%p141_p9), %s640_s16, 1  ;;  %s161_s20 = sand.u32 (!%p141_p9), 1, %s585_s13  }
   0xe   : > { %144 = sbr.rel (%p141_p9) target bundleno = 586 (0x24a), region = 32  ;;  %s435_s24 = sshll.u32 (!%p141_p9), %s161_s20, 5 }
   0xf   : > { %s446_s25 = sshll.u32 (!%p141_p9), %s640_s16, 9  ;;  %s163_s26 = scalar_lea.vmem (!%p141_p9), [#allocation2], %s435_s24 }
  0x10   : > { %s369_s27 = sshll.u32 (!%p141_p9), %s163_s26, 4  ;;  %s596_s5 = smov (!%p141_p9), [#allocation2]   ;;  %s737_s27 = int_to_ptr.vmem [resolvable:$true] %s369_s27 }
  0x11   : > { %s537_s6 = sshll.u32 (!%p141_p9), %s596_s5, 4  ;;  %s538_s6 = int_to_ptr.vmem [resolvable:$false] %s537_s6 }
  0x12   : > { %s539_s7 = scalar_lea.vmem (!%p141_p9), %s538_s6, 1024  ;;  %p540_p0 = scmp.lt.s32.totalorder (!%p141_p9), %s737_s27, %s538_s6 }
  0x13   : > { %v208_v0 = vld [vmem:[%s780_s1 + $0x8] sm:$0xff]  ;;  %vm223_vm0 = vcmask 154624   ;;  %v210_v1 = vld [vmem:[%s780_s1 + $0x18] sm:$0xff]  ;;  %v211_v2 = vld [vmem:[%s781_s2] sm:$0xff]  ;;  %s165_s30 = scalar_select %p164_p10, %s640_s16, 1  ;;  %v595_v3 = vmov 0  }
  0x14   : > { %439 = vmatprep.mubr.msk.f32.mxu0 %vm223_vm0, %v208_v0  ;;  %440 = vmatprep.mubr.msk.f32.mxu1 %vm223_vm0, %v210_v1  ;;  %v212_v4 = vld [vmem:[%s781_s2 + $0x8] sm:$0xff]  ;;  %vm230_vm1 = vcmask 1042432   ;;  %v207_v43 = vld [vmem:[%s780_s1] sm:$0xff]  ;;  %v209_v44 = vld [vmem:[%s780_s1 + $0x10] sm:$0xff]  ;;  %s739_s16 = scalar_lea.sflag [#allocation3], %s161_s20 }
  0x15   : > { %528 = vset.pattern.permute.xlu0 %v595_v3  ;;  %s485_s4 = smul.u32 304, %s165_s30  ;;  %s735_s30 = scalar_lea.hbm %s782_s3, %s446_s25 }
  0x16   : > { %215 = vperm.xlu0 %528, %v211_v2  }
  0x17   : > { %s684_s9 = scalar_lea.vmem %s779_s0, %s485_s4  ;;  %s533_s4 = scalar_lea.vmem %s737_s27, 512 }
  0x18   : > { %v200_v5 = vld [vmem:[%s684_s9 + $0xf8] sm:$0xff]  ;;  %v199_v6 = vld [vmem:[%s684_s9 + $0xf0] sm:$0xff]  ;;  %v198_v7 = vld [vmem:[%s684_s9 + $0xe8] sm:$0xff]  ;;  %p534_p11 = scmp.ne.s32.totalorder %s737_s27, %s533_s4  ;;  %p541_p1 = scmp.lt.s32.totalorder %s539_s7, %s533_s4 }
  0x19   : > { %237 = vmatprep.subr.mxu0 %v200_v5  ;;  %447 = vmatprep.subr.mxu1 %v200_v5  ;;  %v197_v8 = vld [vmem:[%s684_s9 + $0xe0] sm:$0xff]  ;;  %v196_v9 = vld [vmem:[%s684_s9 + $0xd8] sm:$0xff]  ;;  %v195_v10 = vld [vmem:[%s684_s9 + $0xd0] sm:$0xff] }
  0x1a   : > { %220 = vperm.xlu0 %528, %v212_v4   ;;  %238 = vmatpush1.msra.mxu0 %v199_v6  ;;  %v194_v11 = vld [vmem:[%s684_s9 + $0xc8] sm:$0xff]  ;;  %v193_v12 = vld [vmem:[%s684_s9 + $0xc0] sm:$0xff]  ;;  %v192_v13 = vld [vmem:[%s684_s9 + $0xb8] sm:$0xff]  ;;  %p535_p12 = pnand %p534_p11, %p657_p5  ;;  %p542_p2 = por %p541_p1, %p540_p0 }
  0x1b   : > { %466 = vmatpush1.msra.mxu1 %v199_v6  ;;  %239 = vmatprep.subr.mxu0 %v198_v7  ;;  %v191_v14 = vld [vmem:[%s684_s9 + $0xb0] sm:$0xff]  ;;  %v190_v15 = vld [vmem:[%s684_s9 + $0xa8] sm:$0xff]  ;;  %v189_v16 = vld [vmem:[%s684_s9 + $0xa0] sm:$0xff] }
  0x1c   : > { %448 = vmatprep.subr.mxu1 %v198_v7  ;;  %240 = vmatpush1.msra.mxu0 %v197_v8  ;;  %v188_v17 = vld [vmem:[%s684_s9 + $0x98] sm:$0xff]  ;;  %v187_v18 = vld [vmem:[%s684_s9 + $0x90] sm:$0xff]  ;;  %v186_v19 = vld [vmem:[%s684_s9 + $0x88] sm:$0xff]  ;;  %p536_p13 = pneg %p535_p12 }
  0x1d   : > { %467 = vmatpush1.msra.mxu1 %v197_v8  ;;  %241 = vmatprep.subr.mxu0 %v196_v9  ;;  %v185_v20 = vld [vmem:[%s684_s9 + $0x80] sm:$0xff]  ;;  %v184_v21 = vld [vmem:[%s684_s9 + $0x78] sm:$0xff]  ;;  %v183_v22 = vld [vmem:[%s684_s9 + $0x70] sm:$0xff] }
  0x1e   : > { %449 = vmatprep.subr.mxu1 %v196_v9  ;;  %242 = vmatpush1.msra.mxu0 %v195_v10  ;;  %v182_v23 = vld [vmem:[%s684_s9 + $0x68] sm:$0xff]  ;;  %v181_v24 = vld [vmem:[%s684_s9 + $0x60] sm:$0xff]  ;;  %v180_v25 = vld [vmem:[%s684_s9 + $0x58] sm:$0xff]  ;;  %p543_p3 = pnand %p542_p2, %p536_p13 }
  0x1f   : > { %468 = vmatpush1.msra.mxu1 %v195_v10  ;;  %243 = vmatprep.subr.mxu0 %v194_v11  ;;  %v179_v26 = vld [vmem:[%s684_s9 + $0x50] sm:$0xff]  ;;  %v178_v27 = vld [vmem:[%s684_s9 + $0x48] sm:$0xff]  ;;  %v177_v28 = vld [vmem:[%s684_s9 + $0x40] sm:$0xff] }
  0x20   : > { %450 = vmatprep.subr.mxu1 %v194_v11  ;;  %244 = vmatpush1.msra.mxu0 %v193_v12  ;;  %v176_v29 = vld [vmem:[%s684_s9 + $0x38] sm:$0xff]  ;;  %v175_v30 = vld [vmem:[%s684_s9 + $0x30] sm:$0xff]  ;;  %v174_v31 = vld [vmem:[%s684_s9 + $0x28] sm:$0xff] }
  0x21   : > { %469 = vmatpush1.msra.mxu1 %v193_v12  ;;  %245 = vmatprep.subr.mxu0 %v192_v13  ;;  %v173_v32 = vld [vmem:[%s684_s9 + $0x20] sm:$0xff]  ;;  %v172_v33 = vld [vmem:[%s684_s9 + $0x18] sm:$0xff]  ;;  %v171_v34 = vld [vmem:[%s684_s9 + $0x10] sm:$0xff] }
  0x22   : > { %451 = vmatprep.subr.mxu1 %v192_v13  ;;  %246 = vmatpush1.msra.mxu0 %v191_v14  ;;  %v170_v35 = vld [vmem:[%s684_s9 + $0x8] sm:$0xff]  ;;  %v169_v36 = vld [vmem:[%s684_s9] sm:$0xff]  ;;  %v204_v39 = vld [vmem:[%s684_s9 + $0x118] sm:$0xff] }
  0x23   : > { %470 = vmatpush1.msra.mxu1 %v191_v14  ;;  %247 = vmatprep.subr.mxu0 %v190_v15  ;;  %v206_v37 = vld [vmem:[%s684_s9 + $0x128] sm:$0x7]  ;;  %v205_v38 = vld [vmem:[%s684_s9 + $0x120] sm:$0x7]  ;;  %v203_v40 = vld [vmem:[%s684_s9 + $0x110] sm:$0xff] }
  0x24   : > { %452 = vmatprep.subr.mxu1 %v190_v15  ;;  %248 = vmatpush1.msra.mxu0 %v189_v16  ;;  %v202_v41 = vld [vmem:[%s684_s9 + $0x108] sm:$0xff]  ;;  %v201_v42 = vld [vmem:[%s684_s9 + $0x100] sm:$0xff] }
  0x25   : > { %471 = vmatpush1.msra.mxu1 %v189_v16  ;;  %249 = vmatprep.subr.mxu0 %v188_v17 }
  0x26   : > { %453 = vmatprep.subr.mxu1 %v188_v17  ;;  %250 = vmatpush1.msra.mxu0 %v187_v18 }
  0x27   : > { %472 = vmatpush1.msra.mxu1 %v187_v18  ;;  %251 = vmatprep.subr.mxu0 %v186_v19 }
  0x28   : > { %454 = vmatprep.subr.mxu1 %v186_v19  ;;  %252 = vmatpush1.msra.mxu0 %v185_v20 }
  0x29   : > { %473 = vmatpush1.msra.mxu1 %v185_v20  ;;  %253 = vmatprep.subr.mxu0 %v184_v21 }
  0x2a   : > { %455 = vmatprep.subr.mxu1 %v184_v21  ;;  %254 = vmatpush1.msra.mxu0 %v183_v22 }
  0x2b   : > { %474 = vmatpush1.msra.mxu1 %v183_v22  ;;  %255 = vmatprep.subr.mxu0 %v182_v23 }
  0x2c   : > { %456 = vmatprep.subr.mxu1 %v182_v23  ;;  %256 = vmatpush1.msra.mxu0 %v181_v24 }
  0x2d   : > { %475 = vmatpush1.msra.mxu1 %v181_v24  ;;  %257 = vmatprep.subr.mxu0 %v180_v25 }
  0x2e   : > { %457 = vmatprep.subr.mxu1 %v180_v25  ;;  %258 = vmatpush1.msra.mxu0 %v179_v26 }
  0x2f   : > { %476 = vmatpush1.msra.mxu1 %v179_v26  ;;  %259 = vmatprep.subr.mxu0 %v178_v27 }
  0x30   : > { %458 = vmatprep.subr.mxu1 %v178_v27  ;;  %260 = vmatpush1.msra.mxu0 %v177_v28 }
  0x31   : > { %477 = vmatpush1.msra.mxu1 %v177_v28  ;;  %261 = vmatprep.subr.mxu0 %v176_v29 }
  0x32   : > { %459 = vmatprep.subr.mxu1 %v176_v29  ;;  %262 = vmatpush1.msra.mxu0 %v175_v30 }
  0x33   : > { %478 = vmatpush1.msra.mxu1 %v175_v30  ;;  %263 = vmatprep.subr.mxu0 %v174_v31 }
  0x34   : > { %460 = vmatprep.subr.mxu1 %v174_v31  ;;  %264 = vmatpush1.msra.mxu0 %v173_v32 }
  0x35   : > { %479 = vmatpush1.msra.mxu1 %v173_v32  ;;  %265 = vmatprep.subr.mxu0 %v172_v33 }
  0x36   : > { %461 = vmatprep.subr.mxu1 %v172_v33  ;;  %266 = vmatpush1.msra.mxu0 %v171_v34 }
  0x37   : > { %480 = vmatpush1.msra.mxu1 %v171_v34  ;;  %267 = vmatprep.subr.mxu0 %v170_v35 }
  0x38   : > { %462 = vmatprep.subr.mxu1 %v170_v35  ;;  %268 = vmatpush1.msra.mxu0 %v169_v36 }
  0x39   : > { %481 = vmatpush1.msra.mxu1 %v169_v36  ;;  %437 = vmatprep.subr.msk.mxu0 %vm230_vm1, %v206_v37 }
  0x3a   : > { %463 = vmatprep.subr.msk.mxu1 %vm230_vm1, %v206_v37  ;;  %438 = vmatpush2.msk.msra.mxu0 %vm230_vm1, %v205_v38 }
  0x3b   : > { %482 = vmatpush2.msk.msra.mxu1 %vm230_vm1, %v205_v38  ;;  %297 = vmatprep.subr.mxu0 %v204_v39 }
  0x3c   : > { %464 = vmatprep.subr.mxu1 %v204_v39  ;;  %298 = vmatpush2.msra.mxu0 %v203_v40 }
  0x3d   : > { %483 = vmatpush2.msra.mxu1 %v203_v40  ;;  %299 = vmatprep.subr.mxu0 %v202_v41 }
  0x3e   : > { %465 = vmatprep.subr.mxu1 %v202_v41  ;;  %300 = vmatpush2.msra.mxu0 %v201_v42 }
  0x3f   : > { %484 = vmatpush2.msra.mxu1 %v201_v42  ;;  %302 = vmatmul.mubr.f32.vlgmr.msra.gmra.mxu0 %v207_v43 }
  0x40   : > { %308 = vmatmul.mubr.f32.vlgmr.msra.gmra.mxu1 %v209_v44 }
  0x91   : > { %v216_v45 = vpop.permute.xlu0 %215 }
  0x95   : > { %v221_v48 = vpop.permute.xlu0 %220 }
  0xff   : > { %v303_v46 = vpop.f32.mrf.mxu0 }
 0x100   : > { %v309_v47 = vpop.f32.mrf.mxu1  ;;  %v304_v51 = vadd.f32 %v303_v46, %v216_v45 }
 0x101   : > { %v305_v49 = vpop.f32.mrf.mxu0  ;;  %v310_v53 = vadd.f32 %v309_v47, %v221_v48 }
 0x102   : > { %v311_v50 = vpop.f32.mrf.mxu1  ;;  %v306_v52 = vadd.f32 %v305_v49, %v216_v45 }
 0x103   : > { %v312_v54 = vadd.f32 %v311_v50, %v221_v48 }
 0x104   : > { %v314_v55 = vadd.f32 %v306_v52, %v304_v51 }
 0x105   : > { %v317_v56 = vadd.f32 %v312_v54, %v310_v53 }
 0x106   : > { %315 = vadd.xlane.f32.xlu1 %v314_v55 }
 0x10a   : > { %318 = vadd.xlane.f32.xlu1 %v317_v56 }
 0x18f   : > { %v316_v57 = vpop.xlane.xlu1 %315 }
 0x190   : > { %v321_v58 = vmul.f32 0.00390625, %v316_v57 }
 0x192   : > { %v323_v59 = vsub.f32 %v304_v51, %v321_v58  ;;  %v324_v60 = vsub.f32 %v306_v52, %v321_v58 }
 0x193   : > { %v319_v61 = vpop.xlane.xlu1 %318 }
 0x194   : > { %v322_v62 = vmul.f32 0.00390625, %v319_v61  ;;  %v327_v63 = vmul.f32 %v323_v59, %v323_v59  ;;  %v328_v0 = vmul.f32 %v324_v60, %v324_v60 }
 0x196   : > { %v325_v1 = vsub.f32 %v310_v53, %v322_v62  ;;  %v326_v2 = vsub.f32 %v312_v54, %v322_v62  ;;  %v331_v3 = vadd.f32 %v328_v0, %v327_v63 }
 0x198   : > { %332 = vadd.xlane.f32.xlu0 %v331_v3  ;;  %v329_v4 = vmul.f32 %v325_v1, %v325_v1  ;;  %v330_v5 = vmul.f32 %v326_v2, %v326_v2 }
 0x19a   : > { %v334_v6 = vadd.f32 %v330_v5, %v329_v4 }
 0x19c   : > { %335 = vadd.xlane.f32.xlu1 %v334_v6 }
 0x221   : > { %v333_v7 = vpop.xlane.xlu0 %332 }
 0x222   : > { %v337_v8 = vmul.f32 0.00390625, %v333_v7 }
 0x224   : > { %v339_v9 = vadd.f32 1e-05, %v337_v8 }
 0x225   : > { %v336_v10 = vpop.xlane.xlu1 %335 }
 0x226   : > { %529 = vrsqrt.f32 %v339_v9  ;;  %v338_v11 = vmul.f32 0.00390625, %v336_v10 }
 0x228   : > { %v340_v12 = vadd.f32 1e-05, %v338_v11 }
 0x22a   : > { %531 = vrsqrt.f32 %v340_v12 }
 0x233   : > { %v530_v13 = vpop.eup %529 }
 0x234   : > { %v343_v14 = vmul.f32 %v530_v13, %v323_v59  ;;  %v344_v15 = vmul.f32 %v530_v13, %v324_v60 }
 0x236   : > { %v347_v16 = vmax.f32 %v343_v14, 0.0  ;;  %v348_v17 = vmax.f32 %v344_v15, 0.0 }
 0x237   : > { %v532_v18 = vpop.eup %531 }
 0x238   : > { %351 = vst [vmem:[%s163_s26] sm:$0xff] %v347_v16  ;;  %352 = vst [vmem:[%s163_s26 + $0x8] sm:$0xff] %v348_v17  ;;  %v345_v19 = vmul.f32 %v532_v18, %v325_v1  ;;  %v346_v20 = vmul.f32 %v532_v18, %v326_v2 }
 0x23a   : > { %v349_v21 = vmax.f32 %v345_v19, 0.0  ;;  %v350_v22 = vmax.f32 %v346_v20, 0.0 }
 0x23c   : > { %353 = vst [vmem:[%s163_s26 + $0x10] sm:$0xff] %v349_v21  ;;  %354 = vst [vmem:[%s163_s26 + $0x18] sm:$0xff] %v350_v22 }
 0x23d   : > { %546 = shalt.err (!%p543_p3)
}
 0x23e   : > { %s547_s8 = scalar_lea.hbm %s735_s30, 512  ;;  %s551_s11 = scalar_lea.hbm %s782_s3, 1024 }
 0x23f   : > { %p548_p4 = scmp.ne.s32.totalorder %s735_s30, %s547_s8  ;;  %p552_p9 = scmp.lt.s32.totalorder %s735_s30, %s782_s3 }
 0x240   : > { %p553_p10 = scmp.lt.s32.totalorder %s551_s11, %s547_s8 }
 0x241   : > { %p549_p7 = pnand %p548_p4, %p657_p5 }
 0x242   : > { %p554_p11 = por %p553_p10, %p552_p9 }
 0x243   : > { %p550_p8 = pneg %p549_p7 }
 0x245   : > { %p555_p12 = pnand %p554_p11, %p550_p8 }
 0x247   : > { %558 = shalt.err (!%p555_p12)
}
 0x248   : > { %s597_s20 = smov 256   ;;  %s598_s24 = smov 16  }
 0x249   : > { %486 = dma.vmem_to_hbm [thread:$0]  (%p657_p5), %s737_s27, 512, %s735_s30, %s739_s16, %s597_s20, %s597_s20, %s598_s24  }
 0x24a PF: > { %p492_p13 = scmp.ge.s32.totalorder %s593_s15, 2  ;;  %s384_s25 = sand.u32 1, %s581_s12  }
 0x24b   : > { %s385_s26 = scalar_lea.sflag [#allocation3], %s384_s25 }
 0x24c   : > { %p489_p0 = pnand %p492_p13, %p661_p6 }
 0x24e   : > { %p490_p1 = pneg %p489_p0 }
 0x250   : > { %576 = dma.done.wait (%p490_p1), %s385_s26, 512  }
 0x251   : > { %578 = vsyncadd (%p490_p1), %s385_s26, 4294966784  ;;  %p13_p2 = scmp.ge.s32.totalorder %s644_s18, 4   ;;  %s785_s12 = smov %s585_s13 }
 0x252   : > { %s786_s13 = smov %s589_s14  ;;  %s787_s14 = smov %s655_s21 }
 0x253   : > { %s788_s15 = smov %s644_s18  ;;  %15 = sbr.rel (!%p13_p2) target bundleno = 3 (0x3), region = 67 }
 0x258   :  { %390 = vsyncpa [#allocation3], 1 }
 0x259   :  { %392 = vsyncpa [#allocation3 + $0x1], 1 }

</bundles_post_ra>
